<compile_context>
chip_gen: v7x
topology: tpu7x:2x2x1
jax: 0.10.0
libtpu: 0.0.40
codegen_flags: <defaults>
</compile_context>

<pallas_src>
import jax
import jax.numpy as jnp
from jax.experimental import pallas as pl
from jax.experimental.pallas import tpu as pltpu


def non_connected_kernel(x_ref, w1_ref, b1_ref, w2_ref, b2_ref, out_ref):
    """One batch tile of the `non_connected` forward pass.

    x_ref  : [TB, Qp]   input tile
    w1_ref : [Qp, Hp]   masked weight of another_layer_1, already transposed
    b1_ref : [1,  Hp]
    w2_ref : [Hp, Qp]   weight of another_layer_2, already transposed
    b2_ref : [1,  Qp]
    out_ref: [TB, Qp]
    """
    x = x_ref[...]                                                     # [TB, Qp]

    # another_layer_1 + Sigmoid (MXU consumes [in, out] directly, no .T)
    h = jnp.dot(x, w1_ref[...], preferred_element_type=jnp.float32)    # [TB, Hp]
    h = jax.nn.sigmoid(h + b1_ref[...])

    # another_layer_2 + Sigmoid
    o = jnp.dot(h, w2_ref[...], preferred_element_type=jnp.float32)    # [TB, Qp]
    out_ref[...] = jax.nn.sigmoid(o + b2_ref[...])


def _round_up(x, m):
    return ((x + m - 1) // m) * m


def non_connected_forward(x, w1, mask, b1, w2, b2, *, tb_max=512):
    """sigmoid(x @ (w1*mask)^T + b1) -> sigmoid(h @ w2^T + b2), via Pallas.

    w1: [H, Q], mask: [H, Q], b1: [1, H], w2: [Q, H], b2: [1, Q] (PyTorch Linear
    convention).  All the layout fixes (mask fold, transpose, lane padding) are
    done once here, outside the kernel.
    """
    B, Q = x.shape
    H = w1.shape[0]

    # Fold the compile-time prune mask into the weight once; pre-transpose so
    # the kernel sees [in, out] operands and never hits the XLU.
    w1t = (w1 * mask).T            # [Q, H]
    w2t = w2.T                     # [H, Q]

    # Lane-dense padding: feature/hidden dims to multiples of 128; batch tile
    # is a multiple of 8 sublanes.  Zero padding keeps the math exact for the
    # sliced-back region (padded hidden units feed only zero w2 columns).
    Qp = _round_up(Q, 128)
    Hp = _round_up(H, 128)
    TB = min(tb_max, _round_up(B, 8))
    Bp = _round_up(B, TB)

    f32 = jnp.float32
    xp  = jnp.zeros((Bp, Qp), f32).at[:B, :Q].set(x.astype(f32))
    w1p = jnp.zeros((Qp, Hp), f32).at[:Q, :H].set(w1t.astype(f32))
    b1p = jnp.zeros((1, Hp), f32).at[:, :H].set(jnp.reshape(b1, (1, H)).astype(f32))
    w2p = jnp.zeros((Hp, Qp), f32).at[:H, :Q].set(w2t.astype(f32))
    b2p = jnp.zeros((1, Qp), f32).at[:, :Q].set(jnp.reshape(b2, (1, Q)).astype(f32))

    grid = (Bp // TB,)

    out_p = pl.pallas_call(
        non_connected_kernel,
        out_shape=jax.ShapeDtypeStruct((Bp, Qp), f32),
        grid=grid,
        in_specs=[
            pl.BlockSpec((TB, Qp), lambda i: (i, 0)),   # x: tiled over batch
            pl.BlockSpec((Qp, Hp), lambda i: (0, 0)),   # w1: resident across grid
            pl.BlockSpec((1, Hp),  lambda i: (0, 0)),   # b1: resident
            pl.BlockSpec((Hp, Qp), lambda i: (0, 0)),   # w2: resident
            pl.BlockSpec((1, Qp),  lambda i: (0, 0)),   # b2: resident
        ],
        out_specs=pl.BlockSpec((TB, Qp), lambda i: (i, 0)),
        compiler_params=pltpu.CompilerParams(
            # batch axis is independent -> shard across TCs on v7x megacore
            dimension_semantics=("parallel",),
        ),
        cost_estimate=pl.CostEstimate(
            flops=2 * Bp * Hp * (Qp + Qp),
            transcendentals=Bp * (Hp + Qp),
            bytes_accessed=4 * (2 * Bp * Qp + Qp * Hp + Hp * Qp + Hp + Qp),
        ),
    )(xp, w1p, b1p, w2p, b2p)

    return out_p[:B, :Q]


def init_params(key, q_count, t_count, k):
    """Deterministic parameter init mimicking torch.nn.Linear defaults
    (uniform in +/- 1/sqrt(fan_in))."""
    hidden = t_count + k
    k1, k2, k3, k4, k5 = jax.random.split(key, 5)

    bound1 = 1.0 / jnp.sqrt(q_count)
    w1 = jax.random.uniform(k1, (hidden, q_count), jnp.float32, -bound1, bound1)
    b1 = jax.random.uniform(k2, (1, hidden), jnp.float32, -bound1, bound1)

    bound2 = 1.0 / jnp.sqrt(hidden)
    w2 = jax.random.uniform(k3, (q_count, hidden), jnp.float32, -bound2, bound2)
    b2 = jax.random.uniform(k4, (1, q_count), jnp.float32, -bound2, bound2)

    # questation_type: binary [t_count, q_count] matrix (deterministic)
    questation_type = (jax.random.uniform(k5, (t_count, q_count)) > 0.5).astype(jnp.float32)

    # prune mask a = cat(ones[k, q_count], questation_type) -> [k + t_count, q_count]
    mask = jnp.concatenate([jnp.ones((k, q_count), jnp.float32), questation_type], axis=0)
    return w1, mask, b1, w2, b2


if __name__ == "__main__":
    # Small shapes consistent with the module: q_count features, hidden = t_count + k.
    batch, q_count, t_count, k = 8, 16, 4, 4

    key = jax.random.PRNGKey(0)
    kx, kp = jax.random.split(key)
    x = jax.random.normal(kx, (batch, q_count), jnp.float32)
    w1, mask, b1, w2, b2 = init_params(kp, q_count, t_count, k)

    out = non_connected_forward(x, w1, mask, b1, w2, b2)
    jax.block_until_ready(out)

    # Pure-JAX reference of the same math (un-padded, un-transposed).
    h_ref = jax.nn.sigmoid(x @ (w1 * mask).T + b1)
    o_ref = jax.nn.sigmoid(h_ref @ w2.T + b2)
    assert out.shape == (batch, q_count)
    assert jnp.allclose(out, o_ref, atol=1e-5), "mismatch vs reference"

    print("KERNEL_OK")
</pallas_src>

<mosaic_0001>
module attributes {stable_mosaic.version = 11 : i64} {
  func.func @non_connected_kernel(%arg0: i32, %arg1: memref<8x128xf32, #tpu.memory_space<vmem>>, %arg2: memref<128x128xf32, #tpu.memory_space<vmem>>, %arg3: memref<1x128xf32, #tpu.memory_space<vmem>>, %arg4: memref<128x128xf32, #tpu.memory_space<vmem>>, %arg5: memref<1x128xf32, #tpu.memory_space<vmem>>, %arg6: memref<8x128xf32, #tpu.memory_space<vmem>>) attributes {dimension_semantics = [#tpu.dimension_semantics<parallel>], iteration_bounds = array<i64: 1>, scalar_prefetch = 0 : i64, scratch_operands = 0 : i64, tpu.core_type = #tpu.core_type<tc>, window_params = [{transform_indices = @transform_0, window_bounds = array<i64: 8, 128>}, {pipeline_mode = #tpu.pipeline_mode<synchronous>, transform_indices = @transform_1, window_bounds = array<i64: 128, 128>}, {pipeline_mode = #tpu.pipeline_mode<synchronous>, transform_indices = @transform_2, window_bounds = array<i64: 1, 128>}, {pipeline_mode = #tpu.pipeline_mode<synchronous>, transform_indices = @transform_3, window_bounds = array<i64: 128, 128>}, {pipeline_mode = #tpu.pipeline_mode<synchronous>, transform_indices = @transform_4, window_bounds = array<i64: 1, 128>}, {transform_indices = @transform_5, window_bounds = array<i64: 8, 128>}]} {
    %c0 = arith.constant 0 : index
    %c0_0 = arith.constant 0 : index
    %0 = vector.load %arg1[%c0, %c0_0] : memref<8x128xf32, #tpu.memory_space<vmem>>, vector<8x128xf32>
    %c0_1 = arith.constant 0 : index
    %c0_2 = arith.constant 0 : index
    %1 = vector.load %arg2[%c0_1, %c0_2] : memref<128x128xf32, #tpu.memory_space<vmem>>, vector<128x128xf32>
    %cst = arith.constant dense<0.000000e+00> : vector<8x128xf32>
    %2 = tpu.matmul %0, %1, %cst {dimension_numbers = #tpu.dot_dimension_numbers<[1], [0], [0], [1], [0, 0, 1, 1], [], []>} : vector<8x128xf32>, vector<128x128xf32>, vector<8x128xf32> -> vector<8x128xf32>
    %c0_3 = arith.constant 0 : index
    %c0_4 = arith.constant 0 : index
    %3 = vector.load %arg3[%c0_3, %c0_4] : memref<1x128xf32, #tpu.memory_space<vmem>>, vector<1x128xf32>
    %4 = vector.broadcast %3 : vector<1x128xf32> to vector<8x128xf32>
    %5 = arith.addf %2, %4 : vector<8x128xf32>
    %6 = arith.negf %5 : vector<8x128xf32>
    %7 = math.exp %6 : vector<8x128xf32>
    %cst_5 = arith.constant 1.000000e+00 : f32
    %8 = vector.broadcast %cst_5 : f32 to vector<8x128xf32>
    %9 = arith.addf %8, %7 : vector<8x128xf32>
    %10 = arith.divf %8, %9 : vector<8x128xf32>
    %c0_6 = arith.constant 0 : index
    %c0_7 = arith.constant 0 : index
    %11 = vector.load %arg4[%c0_6, %c0_7] : memref<128x128xf32, #tpu.memory_space<vmem>>, vector<128x128xf32>
    %cst_8 = arith.constant dense<0.000000e+00> : vector<8x128xf32>
    %12 = tpu.matmul %10, %11, %cst_8 {dimension_numbers = #tpu.dot_dimension_numbers<[1], [0], [0], [1], [0, 0, 1, 1], [], []>} : vector<8x128xf32>, vector<128x128xf32>, vector<8x128xf32> -> vector<8x128xf32>
    %c0_9 = arith.constant 0 : index
    %c0_10 = arith.constant 0 : index
    %13 = vector.load %arg5[%c0_9, %c0_10] : memref<1x128xf32, #tpu.memory_space<vmem>>, vector<1x128xf32>
    %14 = vector.broadcast %13 : vector<1x128xf32> to vector<8x128xf32>
    %15 = arith.addf %12, %14 : vector<8x128xf32>
    %16 = arith.negf %15 : vector<8x128xf32>
    %17 = math.exp %16 : vector<8x128xf32>
    %cst_11 = arith.constant 1.000000e+00 : f32
    %18 = vector.broadcast %cst_11 : f32 to vector<8x128xf32>
    %19 = arith.addf %18, %17 : vector<8x128xf32>
    %20 = arith.divf %18, %19 : vector<8x128xf32>
    %c0_12 = arith.constant 0 : index
    %c0_13 = arith.constant 0 : index
    %21 = vector.load %arg6[%c0_12, %c0_13] : memref<8x128xf32, #tpu.memory_space<vmem>>, vector<8x128xf32>
    tpu.vector_store %arg6[%c0_12, %c0_13], %20 {strides = array<i32>} : memref<8x128xf32, #tpu.memory_space<vmem>>, vector<8x128xf32>,
    return
  }
  func.func @transform_0(%arg0: i32) -> (i32, i32) {
    %c0_i32 = arith.constant 0 : i32
    %c0_i32_0 = arith.constant 0 : i32
    return %arg0, %c0_i32 : i32, i32
  }
  func.func @transform_1(%arg0: i32) -> (i32, i32) {
    %c0_i32 = arith.constant 0 : i32
    %c0_i32_0 = arith.constant 0 : i32
    %c0_i32_1 = arith.constant 0 : i32
    return %c0_i32, %c0_i32_0 : i32, i32
  }
  func.func @transform_2(%arg0: i32) -> (i32, i32) {
    %c0_i32 = arith.constant 0 : i32
    %c0_i32_0 = arith.constant 0 : i32
    %c0_i32_1 = arith.constant 0 : i32
    return %c0_i32, %c0_i32_0 : i32, i32
  }
  func.func @transform_3(%arg0: i32) -> (i32, i32) {
    %c0_i32 = arith.constant 0 : i32
    %c0_i32_0 = arith.constant 0 : i32
    %c0_i32_1 = arith.constant 0 : i32
    return %c0_i32, %c0_i32_0 : i32, i32
  }
  func.func @transform_4(%arg0: i32) -> (i32, i32) {
    %c0_i32 = arith.constant 0 : i32
    %c0_i32_0 = arith.constant 0 : i32
    %c0_i32_1 = arith.constant 0 : i32
    return %c0_i32, %c0_i32_0 : i32, i32
  }
  func.func @transform_5(%arg0: i32) -> (i32, i32) {
    %c0_i32 = arith.constant 0 : i32
    %c0_i32_0 = arith.constant 0 : i32
    return %arg0, %c0_i32 : i32, i32
  }
}

</mosaic_0001>

<bundles_post_ra>
// kernel: tpu_custom_call.1
= control target key start
LH: loop header
LB: loop body
LE: loop exit
PB: predicated region body
PF: predicated region fallthrough
CT: control target
= control target key end

     0   :  { %10 = vsyncpa [#allocation3], 0  ;;  %s658_s0 = inlined_call_operand.hbm [shape: f32[8,128], index: 0, kind: input, shape index: {}]   ;;  %s659_s1 = inlined_call_operand.hbm [shape: f32[128,128], index: 1, kind: input, shape index: {}]   ;;  %s660_s2 = inlined_call_operand.vmem [shape: f32[1,128], index: 2, kind: input, shape index: {}]   ;;  %s661_s3 = inlined_call_operand.hbm [shape: f32[128,128], index: 3, kind: input, shape index: {}]   ;;  %s662_s4 = inlined_call_operand.vmem [shape: f32[1,128], index: 4, kind: input, shape index: {}]   ;;  %s663_s5 = inlined_call_operand.hbm [shape: f32[8,128], index: 5, kind: output, shape index: {}]  }
   0x1   :  { %11 = vsyncpa [#allocation6], 0 }
   0x2   :  { %12 = vsyncpa [#allocation4], 0  ;;  %s543_s18 = smov [#allocation5]   ;;  %s449_s22 = scalar_lea.hbm %s659_s1, 2048 }
   0x3   :  { %s28_s19 = sshll.u32 %s543_s18, 4  ;;  %p450_p0 = scmp.ne.s32.totalorder %s659_s1, %s449_s22  ;;  %s29_s19 = int_to_ptr.vmem [resolvable:$true] %s28_s19 }
   0x4   :  { %p453_p1 = scmp.lt.u32.totalorder %s449_s22, %s659_s1 }
   0x6   :  { %p455_p2 = pnand %p453_p1, %p450_p0 }
   0x8   :  { %458 = shalt.err (!%p455_p2)
}
   0x9   :  { %s459_s27 = scalar_lea.vmem %s29_s19, 2048  ;;  %p464_p4 = scmp.lt.s32.totalorder %s29_s19, %s29_s19 }
   0xa   :  { %p460_p3 = scmp.ne.s32.totalorder %s29_s19, %s459_s27  ;;  %p465_p5 = scmp.lt.s32.totalorder %s459_s27, %s459_s27 }
   0xc   :  { %p466_p6 = por %p465_p5, %p464_p4 }
   0xe   :  { %p467_p7 = pnand %p466_p6, %p460_p3 }
  0x10   :  { %470 = shalt.err (!%p467_p7)
}
  0x11   :  { %s544_s28 = smov 128   ;;  %s545_s29 = smov 8  }
  0x12   :  { %34 = dma.hbm_to_vmem [thread:$0]  %s659_s1, 2048, %s29_s19, [#allocation6], %s544_s28, %s544_s28, %s545_s29  }
  0x13   :  { %s546_s7 = smov [#allocation2]   ;;  %s547_s9 = smov [#allocation7]  }
  0x14   :  { %s19_s8 = sshll.u32 %s546_s7, 4  ;;  %s42_s10 = sshll.u32 %s547_s9, 4  ;;  %s20_s8 = int_to_ptr.vmem [resolvable:$true] %s19_s8  ;;  %s43_s10 = int_to_ptr.vmem [resolvable:$true] %s42_s10 }
  0x15   :  { %s471_s13 = scalar_lea.hbm %s658_s0, 128 }
  0x16   :  { %p472_p8 = scmp.ne.s32.totalorder %s658_s0, %s471_s13  ;;  %p475_p9 = scmp.lt.u32.totalorder %s471_s13, %s658_s0 }
  0x18   :  { %p477_p10 = pnand %p475_p9, %p472_p8 }
  0x1a   :  { %480 = shalt.err (!%p477_p10)
}
  0x1b   :  { %s481_s1 = scalar_lea.vmem %s20_s8, 128  ;;  %p486_p12 = scmp.lt.s32.totalorder %s20_s8, %s20_s8 }
  0x1c   :  { %p482_p11 = scmp.ne.s32.totalorder %s20_s8, %s481_s1  ;;  %p487_p13 = scmp.lt.s32.totalorder %s481_s1, %s481_s1 }
  0x1e   :  { %p488_p0 = por %p487_p13, %p486_p12 }
  0x20   :  { %p489_p1 = pnand %p488_p0, %p482_p11 }
  0x22   :  { %492 = shalt.err (!%p489_p1)
}
  0x23   :  { %22 = dma.hbm_to_vmem [thread:$0]  %s658_s0, 128, %s20_s8, [#allocation3]  }
  0x24   :  { %s493_s22 = scalar_lea.hbm %s661_s3, 2048 }
  0x25   :  { %p494_p2 = scmp.ne.s32.totalorder %s661_s3, %s493_s22  ;;  %p497_p3 = scmp.lt.u32.totalorder %s493_s22, %s661_s3 }
  0x27   :  { %p499_p4 = pnand %p497_p3, %p494_p2 }
  0x29   :  { %502 = shalt.err (!%p499_p4)
}
  0x2a   :  { %s503_s27 = scalar_lea.vmem %s43_s10, 2048  ;;  %p508_p6 = scmp.lt.s32.totalorder %s43_s10, %s43_s10 }
  0x2b   :  { %p504_p5 = scmp.ne.s32.totalorder %s43_s10, %s503_s27  ;;  %p509_p7 = scmp.lt.s32.totalorder %s503_s27, %s503_s27 }
  0x2d   :  { %p510_p8 = por %p509_p7, %p508_p6 }
  0x2f   :  { %p511_p9 = pnand %p510_p8, %p504_p5 }
  0x31   :  { %514 = shalt.err (!%p511_p9)
}
  0x32   :  { %48 = dma.hbm_to_vmem [thread:$0]  %s661_s3, 2048, %s43_s10, [#allocation6], %s544_s28, %s544_s28, %s545_s29  }
  0x33   :  { %537 = dma.done.wait [#allocation3], 128  }
  0x34   :  { %538 = vsyncadd [#allocation3], 4294967168 }
  0x35   :  { %539 = dma.done.wait [#allocation6], 4096  }
  0x36   :  { %540 = vsyncadd [#allocation6], 4294963200  ;;  %v548_v0 = vmov 0.0|0.0   ;;  %vm549_vm0 = vmmov 0   ;;  %v550_v1 = vmov 0.0   ;;  %v61_v2 = vld [vmem:[#allocation5] sm:$0xff] }
  0x37   :  { %384 = vmatprep.subr.bf16.mxu0 %v548_v0  ;;  %346 = vmatprep.mubr.msk.f32.mxu0 %vm549_vm0, %v550_v1  ;;  %v62_v3 = vld [vmem:[#allocation5 + $0x8] sm:$0xff]  ;;  %v63_v4 = vld [vmem:[#allocation5 + $0x10] sm:$0xff]  ;;  %v64_v6 = vld [vmem:[#allocation5 + $0x18] sm:$0xff] }
  0x38   :  { %408 = vmatprep.subr.bf16.mxu1 %v548_v0  ;;  %381 = vmatprep.mubr.msk.f32.mxu1 %vm549_vm0, %v550_v1  ;;  %v385_v5 = vpack.c.bf16 %v62_v3, %v61_v2  ;;  %v388_v7 = vpack.c.bf16 %v64_v6, %v63_v4  ;;  %v65_v8 = vld [vmem:[#allocation5 + $0x20] sm:$0xff]  ;;  %v66_v9 = vld [vmem:[#allocation5 + $0x28] sm:$0xff]  ;;  %v67_v14 = vld [vmem:[#allocation5 + $0x30] sm:$0xff] }
  0x39   :  { %v160_v10 = vld [vmem:[#allocation7] sm:$0xff]  ;;  %v161_v11 = vld [vmem:[#allocation7 + $0x8] sm:$0xff]  ;;  %v391_v12 = vpack.c.bf16 %v66_v9, %v65_v8  ;;  %v68_v15 = vld [vmem:[#allocation5 + $0x38] sm:$0xff] }
  0x3a   :  { %386 = vmatpush3.bf16.msra.mxu0 %v385_v5  ;;  %v409_v13 = vpack.c.bf16 %v161_v11, %v160_v10  ;;  %v394_v16 = vpack.c.bf16 %v68_v15, %v67_v14  ;;  %v69_v17 = vld [vmem:[#allocation5 + $0x40] sm:$0xff]  ;;  %v70_v18 = vld [vmem:[#allocation5 + $0x48] sm:$0xff]  ;;  %v71_v20 = vld [vmem:[#allocation5 + $0x50] sm:$0xff] }
  0x3b   :  { %387 = vmatprep.subr.bf16.mxu0 %v548_v0  ;;  %v397_v19 = vpack.c.bf16 %v70_v18, %v69_v17  ;;  %v72_v21 = vld [vmem:[#allocation5 + $0x58] sm:$0xff]  ;;  %v73_v23 = vld [vmem:[#allocation5 + $0x60] sm:$0xff]  ;;  %v74_v24 = vld [vmem:[#allocation5 + $0x68] sm:$0xff] }
  0x3c   :  { %410 = vmatpush3.bf16.msra.mxu1 %v409_v13  ;;  %v400_v22 = vpack.c.bf16 %v72_v21, %v71_v20  ;;  %v403_v25 = vpack.c.bf16 %v74_v24, %v73_v23  ;;  %v75_v26 = vld [vmem:[#allocation5 + $0x70] sm:$0xff]  ;;  %v76_v27 = vld [vmem:[#allocation5 + $0x78] sm:$0xff]  ;;  %v164_v33 = vld [vmem:[#allocation7 + $0x20] sm:$0xff] }
  0x3d   :  { %411 = vmatprep.subr.bf16.mxu1 %v548_v0  ;;  %v406_v28 = vpack.c.bf16 %v76_v27, %v75_v26  ;;  %v60_v29 = vld [vmem:[#allocation2] sm:$0xff]  ;;  %v162_v30 = vld [vmem:[#allocation7 + $0x10] sm:$0xff]  ;;  %v165_v34 = vld [vmem:[#allocation7 + $0x28] sm:$0xff] }
  0x3e   :  { %389 = vmatpush3.bf16.msra.mxu0 %v388_v7  ;;  %v163_v31 = vld [vmem:[#allocation7 + $0x18] sm:$0xff]  ;;  %v415_v35 = vpack.c.bf16 %v165_v34, %v164_v33  ;;  %v166_v36 = vld [vmem:[#allocation7 + $0x30] sm:$0xff]  ;;  %v168_v39 = vld [vmem:[#allocation7 + $0x40] sm:$0xff] }
  0x3f   :  { %390 = vmatprep.subr.bf16.mxu0 %v548_v0  ;;  %v412_v32 = vpack.c.bf16 %v163_v31, %v162_v30  ;;  %v167_v37 = vld [vmem:[#allocation7 + $0x38] sm:$0xff]  ;;  %v169_v40 = vld [vmem:[#allocation7 + $0x48] sm:$0xff]  ;;  %v170_v42 = vld [vmem:[#allocation7 + $0x50] sm:$0xff] }
  0x40   :  { %v418_v38 = vpack.c.bf16 %v167_v37, %v166_v36  ;;  %v421_v41 = vpack.c.bf16 %v169_v40, %v168_v39  ;;  %v171_v43 = vld [vmem:[#allocation7 + $0x58] sm:$0xff]  ;;  %v172_v45 = vld [vmem:[#allocation7 + $0x60] sm:$0xff]  ;;  %v173_v46 = vld [vmem:[#allocation7 + $0x68] sm:$0xff] }
  0x41   :  { %413 = vmatpush3.bf16.msra.mxu1 %v412_v32  ;;  %v424_v44 = vpack.c.bf16 %v171_v43, %v170_v42  ;;  %v427_v47 = vpack.c.bf16 %v173_v46, %v172_v45  ;;  %v174_v48 = vld [vmem:[#allocation7 + $0x70] sm:$0xff]  ;;  %v175_v49 = vld [vmem:[#allocation7 + $0x78] sm:$0xff] }
  0x42   :  { %392 = vmatpush3.bf16.msra.mxu0 %v391_v12  ;;  %414 = vmatprep.subr.bf16.mxu1 %v548_v0  ;;  %v430_v50 = vpack.c.bf16 %v175_v49, %v174_v48  ;;  %v276_v51 = vld [vmem:[%s660_s2] ss:$0 sm:$0xff]  ;;  %s551_s2 = smov [#allocation8]  }
  0x43   :  { %393 = vmatprep.subr.bf16.mxu0 %v548_v0  ;;  %v278_v59 = vld [vmem:[%s662_s4] ss:$0 sm:$0xff]  ;;  %s266_s7 = sshll.u32 %s551_s2, 4  ;;  %s267_s7 = int_to_ptr.vmem [resolvable:$true] %s266_s7 }
  0x44   :  { %s515_s8 = scalar_lea.vmem %s267_s7, 128  ;;  %p520_p11 = scmp.lt.s32.totalorder %s267_s7, %s267_s7 }
  0x45   :  { %416 = vmatpush3.bf16.msra.mxu1 %v415_v35  ;;  %p516_p10 = scmp.ne.s32.totalorder %s267_s7, %s515_s8  ;;  %p521_p12 = scmp.lt.s32.totalorder %s515_s8, %s515_s8 }
  0x46   :  { %395 = vmatpush3.bf16.msra.mxu0 %v394_v16  ;;  %417 = vmatprep.subr.bf16.mxu1 %v548_v0 }
  0x47   :  { %396 = vmatprep.subr.bf16.mxu0 %v548_v0  ;;  %p522_p13 = por %p521_p12, %p520_p11 }
  0x49   :  { %419 = vmatpush3.bf16.msra.mxu1 %v418_v38  ;;  %p523_p0 = pnand %p522_p13, %p516_p10 }
  0x4a   :  { %398 = vmatpush3.bf16.msra.mxu0 %v397_v19  ;;  %420 = vmatprep.subr.bf16.mxu1 %v548_v0 }
  0x4b   :  { %399 = vmatprep.subr.bf16.mxu0 %v548_v0 }
  0x4d   :  { %422 = vmatpush3.bf16.msra.mxu1 %v421_v41 }
  0x4e   :  { %401 = vmatpush3.bf16.msra.mxu0 %v400_v22  ;;  %423 = vmatprep.subr.bf16.mxu1 %v548_v0 }
  0x4f   :  { %402 = vmatprep.subr.bf16.mxu0 %v548_v0 }
  0x51   :  { %425 = vmatpush3.bf16.msra.mxu1 %v424_v44 }
  0x52   :  { %404 = vmatpush3.bf16.msra.mxu0 %v403_v25  ;;  %426 = vmatprep.subr.bf16.mxu1 %v548_v0 }
  0x53   :  { %405 = vmatprep.subr.bf16.mxu0 %v548_v0 }
  0x55   :  { %428 = vmatpush3.bf16.msra.mxu1 %v427_v47 }
  0x56   :  { %407 = vmatpush3.bf16.msra.mxu0 %v406_v28  ;;  %429 = vmatprep.subr.bf16.mxu1 %v548_v0 }
  0x59   :  { %347 = vmatmul.mubr.f32.vlgmr.msra.gmra.mrb[0].mxu0 %v60_v29  ;;  %431 = vmatpush3.bf16.msra.mxu1 %v430_v50 }
 0x12c   :  { %v150_v52 = vpop.f32.mrb[0].mxu0 }
 0x12d   :  { %v151_v53 = vadd.f32 %v276_v51, %v150_v52  ;;  %v348_v54 = vpop.f32.mrb[1].mxu0 }
 0x12f   :  { %v277_v55 = vmul.f32 -1.442695, %v151_v53 }
 0x131   :  { %441 = vpow2.f32 %v277_v55 }
 0x13b   :  { %v442_v56 = vpop.eup %441 }
 0x13c   :  { %v157_v57 = vadd.f32 1.0, %v442_v56 }
 0x13e   :  { %443 = vrcp.f32 %v157_v57 }
 0x148   :  { %v444_v58 = vpop.eup %443 }
 0x149   :  { %382 = vmatmul.mubr.f32.vlgmr.msra.gmra.mrb[0].mxu1 %v444_v58 }
 0x21c   :  { %v249_v60 = vpop.f32.mrb[0].mxu1 }
 0x21d   :  { %v250_v61 = vadd.f32 %v278_v59, %v249_v60  ;;  %v383_v62 = vpop.f32.mrb[1].mxu1 }
 0x21f   :  { %v279_v63 = vmul.f32 -1.442695, %v250_v61 }
 0x221   :  { %445 = vpow2.f32 %v279_v63 }
 0x22b   :  { %v446_v0 = vpop.eup %445 }
 0x22c   :  { %v256_v1 = vadd.f32 1.0, %v446_v0 }
 0x22e   :  { %447 = vrcp.f32 %v256_v1 }
 0x238   :  { %v448_v2 = vpop.eup %447 }
 0x239   :  { %259 = vst [vmem:[#allocation8] sm:$0xff] %v448_v2 }
 0x23a   :  { %526 = shalt.err (!%p523_p0)
}
 0x23b   :  { %s527_s10 = scalar_lea.hbm %s663_s5, 128 }
 0x23c   :  { %p528_p1 = scmp.ne.s32.totalorder %s663_s5, %s527_s10  ;;  %p531_p2 = scmp.lt.u32.totalorder %s527_s10, %s663_s5 }
 0x23e   :  { %p533_p3 = pnand %p531_p2, %p528_p1 }
 0x240   :  { %536 = shalt.err (!%p533_p3)
}
 0x241   :  { %269 = dma.vmem_to_hbm [thread:$0]  %s267_s7, 128, %s663_s5, [#allocation4]  }
 0x242   :  { %541 = dma.done.wait [#allocation4], 128  }
 0x243   :  { %542 = vsyncadd [#allocation4], 4294967168 }
 0x244   :  { %273 = vsyncpa [#allocation3], 1 }
 0x245   :  { %274 = vsyncpa [#allocation6], 1 }
 0x246   :  { %275 = vsyncpa [#allocation4], 1 }

</bundles_post_ra>
